<compile_context>
chip_gen: v6e
topology: v6e:2x2x1
jax: 0.10.0
libtpu: 0.0.40
codegen_flags: <defaults>
</compile_context>

<pallas_src>
import math

import jax
import jax.numpy as jnp
from jax.experimental import pallas as pl
from jax.experimental.pallas import tpu as pltpu

# ----- problem sizes (small, consistent with the module) -----
B, N, D = 2, 8, 32          # batch, seq len, embed dim
H = 4                       # num_heads
DH = D // H                 # head dim
MLP = 4 * D                 # mlp hidden (mlp_ratio=4)
R = 4
DD = D // R                 # adapter down_size
EPS1 = 1e-6                 # norm1 eps
EPS2 = 1e-5                 # norm2 / adapter LayerNorm eps (PyTorch default)

# packed-vector slab layout (one (32,128) slab, one DMA)
_ROW_LN1_G, _ROW_LN1_B, _ROW_BQK, _ROW_BO = 0, 1, 2, 3
_ROW_LN2_G, _ROW_LN2_B, _ROW_B1, _ROW_B2 = 4, 5, 6, 7
_ROW_LNA_G, _ROW_LNA_B, _ROW_BD, _ROW_BU = 8, 9, 10, 11
_MASK_ROW0 = 16             # rows 16:32, lanes 0:B*N hold the batch mask
_VEC_ROWS = 32


def _layernorm(v, g, b, eps):
    mu = jnp.mean(v, axis=-1, keepdims=True)
    var = jnp.mean((v - mu) ** 2, axis=-1, keepdims=True)
    return (v - mu) * jax.lax.rsqrt(var + eps) * g + b


def transformer_block_kernel(x_ref, wqkv_ref, w1_ref, w2_ref, wsm_ref, vec_ref, out_ref):
    x = x_ref[...]                                                  # (B*N, D) fp32

    # --- norm1 (eps=1e-6) ---
    h = _layernorm(x, vec_ref[_ROW_LN1_G:_ROW_LN1_G + 1, :D],
                   vec_ref[_ROW_LN1_B:_ROW_LN1_B + 1, :D], EPS1)

    # --- fused [Q*scale | K | V'(Wo folded)] projection ---
    proj = jnp.dot(h, wqkv_ref[...], preferred_element_type=jnp.float32)   # (B*N, 2D+H*D)
    qk = proj[:, :2 * D] + vec_ref[_ROW_BQK:_ROW_BQK + 1, :2 * D]

    # precomputed block-diagonal batch mask (0 / -1e30), one static slice
    neg = vec_ref[_MASK_ROW0:_MASK_ROW0 + B * N, :B * N]            # (B*N, B*N)

    attn = jnp.zeros((B * N, D), jnp.float32)
    for hh in range(H):                                             # static unroll
        lo = hh * DH
        qh = qk[:, lo:lo + DH]                                      # (B*N, DH)
        kh = qk[:, D + lo:D + lo + DH]
        # q @ k^T without an explicit transpose (contract last dims)
        s = jax.lax.dot_general(qh, kh, (((1,), (1,)), ((), ())),
                                preferred_element_type=jnp.float32) + neg
        s = s - jnp.max(s, axis=-1, keepdims=True)
        p = jnp.exp(s)                                              # masked entries -> exactly 0
        p = p * pl.reciprocal(jnp.sum(p, axis=-1, keepdims=True), approx=True)
        # Wo already applied to V at pack time: (B*N,B*N) x (B*N,D) per head
        vp = proj[:, 2 * D + hh * D:2 * D + (hh + 1) * D]           # (B*N, D)
        attn = attn + jnp.dot(p, vp, preferred_element_type=jnp.float32)
    attn = attn + vec_ref[_ROW_BO:_ROW_BO + 1, :D]                  # bo + bv @ Wo

    resid = x + attn

    # --- norm2 (eps=1e-5) ---
    h2 = _layernorm(resid, vec_ref[_ROW_LN2_G:_ROW_LN2_G + 1, :D],
                    vec_ref[_ROW_LN2_B:_ROW_LN2_B + 1, :D], EPS2)

    # --- MLP: Linear -> exact GELU -> Linear ---
    m = jnp.dot(h2, w1_ref[...], preferred_element_type=jnp.float32) \
        + vec_ref[_ROW_B1:_ROW_B1 + 1, :MLP]
    m = 0.5 * m * (1.0 + jax.lax.erf(m * (1.0 / math.sqrt(2.0))))
    out1 = jnp.dot(m, w2_ref[...], preferred_element_type=jnp.float32) \
        + vec_ref[_ROW_B2:_ROW_B2 + 1, :D]

    # --- Adapter: LN('in') -> down -> ReLU -> up (scale=1.0, dropout p=0) ---
    ha = _layernorm(h2, vec_ref[_ROW_LNA_G:_ROW_LNA_G + 1, :D],
                    vec_ref[_ROW_LNA_B:_ROW_LNA_B + 1, :D], EPS2)
    d = jnp.dot(ha, wsm_ref[0:D, 0:DD], preferred_element_type=jnp.float32) \
        + vec_ref[_ROW_BD:_ROW_BD + 1, :DD]
    d = jnp.maximum(d, 0.0)
    out2 = jnp.dot(d, wsm_ref[D:D + DD, 0:D], preferred_element_type=jnp.float32) \
        + vec_ref[_ROW_BU:_ROW_BU + 1, :D]

    out_ref[...] = resid + out1 + out2


def transformer_block(x, packed):
    wqkv_big, w1, w2, wsmall, vec = packed
    x2d = x.reshape(B * N, D)
    args = (x2d, wqkv_big, w1, w2, wsmall, vec)
    # No grid: single invocation, full arrays resident in VMEM, no pipeline
    # double-buffering (nothing to overlap at a one-point grid).
    vmem = pl.BlockSpec(memory_space=pltpu.MemorySpace.VMEM)
    out2d = pl.pallas_call(
        transformer_block_kernel,
        out_shape=jax.ShapeDtypeStruct((B * N, D), jnp.float32),
        in_specs=[vmem] * len(args),
        out_specs=vmem,
    )(*args)
    return out2d.reshape(B, N, D)


def pack_params(params):
    """Fold 1/sqrt(DH) into Q, Wo into V, and pack small params into slabs (f32 host math)."""
    (ln1_g, ln1_b, wqkv, bqkv, wo, bo, ln2_g, ln2_b,
     w1, b1, w2, b2, lna_g, lna_b, wd, bd, wu, bu) = params

    scale = 1.0 / math.sqrt(DH)
    wq = wqkv[:, :D] * scale
    wk = wqkv[:, D:2 * D]
    wv = wqkv[:, 2 * D:]
    bq = bqkv[:, :D] * scale
    bk = bqkv[:, D:2 * D]
    bv = bqkv[:, 2 * D:]

    # Per-head fold of the out-projection into V:  Wv'_h = Wv_h @ Wo[h*DH:(h+1)*DH, :]
    wvp = jnp.concatenate(
        [wv[:, h * DH:(h + 1) * DH] @ wo[h * DH:(h + 1) * DH, :] for h in range(H)],
        axis=1)                                            # (D, H*D)
    wqkv_big = jnp.concatenate([wq, wk, wvp], axis=1)      # (D, 2D + H*D)

    bo_fold = bo + bv @ wo                                 # softmax rows sum to 1

    vec = jnp.zeros((_VEC_ROWS, 128), jnp.float32)         # one DMA: 12 vectors + mask
    vec = vec.at[_ROW_LN1_G, :D].set(ln1_g[0])
    vec = vec.at[_ROW_LN1_B, :D].set(ln1_b[0])
    vec = vec.at[_ROW_BQK, :D].set(bq[0])
    vec = vec.at[_ROW_BQK, D:2 * D].set(bk[0])
    vec = vec.at[_ROW_BO, :D].set(bo_fold[0])
    vec = vec.at[_ROW_LN2_G, :D].set(ln2_g[0])
    vec = vec.at[_ROW_LN2_B, :D].set(ln2_b[0])
    vec = vec.at[_ROW_B1, :MLP].set(b1[0])
    vec = vec.at[_ROW_B2, :D].set(b2[0])
    vec = vec.at[_ROW_LNA_G, :D].set(lna_g[0])
    vec = vec.at[_ROW_LNA_B, :D].set(lna_b[0])
    vec = vec.at[_ROW_BD, :DD].set(bd[0])
    vec = vec.at[_ROW_BU, :D].set(bu[0])

    # precomputed block-diagonal batch mask for the fused (B*N, B*N) score tile
    row_b = jnp.arange(B * N)[:, None] // N
    col_b = jnp.arange(B * N)[None, :] // N
    mask = jnp.where(row_b == col_b, 0.0, -1e30).astype(jnp.float32)
    vec = vec.at[_MASK_ROW0:_MASK_ROW0 + B * N, :B * N].set(mask)

    wsmall = jnp.zeros((D + DD, 128), jnp.float32)         # one DMA for wd / wu
    wsmall = wsmall.at[:D, :DD].set(wd)
    wsmall = wsmall.at[D:D + DD, :D].set(wu)

    return wqkv_big, w1, w2, wsmall, vec


def reference(x, params):
    (ln1_g, ln1_b, wqkv, bqkv, wo, bo, ln2_g, ln2_b,
     w1, b1, w2, b2, lna_g, lna_b, wd, bd, wu, bu) = params

    h = _layernorm(x, ln1_g[0], ln1_b[0], EPS1)
    qkv = h @ wqkv + bqkv[0]
    q, k, v = jnp.split(qkv, 3, axis=-1)

    def heads(t):
        return t.reshape(B, N, H, DH).transpose(0, 2, 1, 3)

    qh, kh, vh = heads(q), heads(k), heads(v)
    s = jnp.einsum('bhnd,bhmd->bhnm', qh, kh) / math.sqrt(DH)
    p = jax.nn.softmax(s, axis=-1)
    ctx = jnp.einsum('bhnm,bhmd->bhnd', p, vh).transpose(0, 2, 1, 3).reshape(B, N, D)
    attn = ctx @ wo + bo[0]

    resid = x + attn
    h2 = _layernorm(resid, ln2_g[0], ln2_b[0], EPS2)

    m = h2 @ w1 + b1[0]
    m = jax.nn.gelu(m, approximate=False)
    out1 = m @ w2 + b2[0]

    ha = _layernorm(h2, lna_g[0], lna_b[0], EPS2)
    d = jnp.maximum(ha @ wd + bd[0], 0.0)
    out2 = d @ wu + bu[0]        # adapter_scalar = 1.0

    return resid + out1 + out2


def init_params(key):
    ks = jax.random.split(key, 20)
    w = lambda k, shape, s=0.05: (s * jax.random.normal(k, shape)).astype(jnp.float32)

    ln1_g = 1.0 + w(ks[0], (1, D), 0.02)
    ln1_b = w(ks[1], (1, D), 0.02)
    wqkv = w(ks[2], (D, 3 * D))         # in_proj_weight^T
    bqkv = w(ks[3], (1, 3 * D), 0.02)
    wo = w(ks[4], (D, D))               # out_proj.weight^T
    bo = w(ks[5], (1, D), 0.02)
    ln2_g = 1.0 + w(ks[6], (1, D), 0.02)
    ln2_b = w(ks[7], (1, D), 0.02)
    w1 = w(ks[8], (D, MLP))
    b1 = w(ks[9], (1, MLP), 0.02)
    w2 = w(ks[10], (MLP, D))
    b2 = w(ks[11], (1, D), 0.02)
    lna_g = 1.0 + w(ks[12], (1, D), 0.02)
    lna_b = w(ks[13], (1, D), 0.02)
    wd = w(ks[14], (D, DD))             # adapter.down_proj.weight^T
    bd = w(ks[15], (1, DD), 0.02)
    wu = w(ks[16], (DD, D))             # adapter.up_proj.weight^T (zeros in torch init; randomized here)
    bu = w(ks[17], (1, D), 0.02)
    return (ln1_g, ln1_b, wqkv, bqkv, wo, bo, ln2_g, ln2_b,
            w1, b1, w2, b2, lna_g, lna_b, wd, bd, wu, bu)


if __name__ == "__main__":
    key = jax.random.PRNGKey(0)
    kx, kp = jax.random.split(key)
    x = jax.random.normal(kx, (B, N, D), dtype=jnp.float32)
    params = init_params(kp)
    packed = pack_params(params)

    out = jax.block_until_ready(transformer_block(x, packed))
    ref = reference(x, params)

    assert out.shape == (B, N, D)
    err = float(jnp.max(jnp.abs(out - ref)))
    # tolerance covers pl.reciprocal(approx=True) in the softmax
    assert jnp.allclose(out, ref, atol=2e-3, rtol=2e-3), err
    print("KERNEL_OK")
</pallas_src>

<mosaic_0001>
module attributes {stable_mosaic.version = 11 : i64} {
  func.func @transformer_block_kernel(%arg0: memref<16x32xf32, #tpu.memory_space<vmem>>, %arg1: memref<32x192xf32, #tpu.memory_space<vmem>>, %arg2: memref<32x128xf32, #tpu.memory_space<vmem>>, %arg3: memref<128x32xf32, #tpu.memory_space<vmem>>, %arg4: memref<40x128xf32, #tpu.memory_space<vmem>>, %arg5: memref<32x128xf32, #tpu.memory_space<vmem>>, %arg6: memref<16x32xf32, #tpu.memory_space<vmem>>) attributes {dimension_semantics = [], scalar_prefetch = 0 : i64, scratch_operands = 0 : i64, tpu.core_type = #tpu.core_type<tc>} {
    %c0 = arith.constant 0 : index
    %c0_0 = arith.constant 0 : index
    %0 = vector.load %arg0[%c0, %c0_0] : memref<16x32xf32, #tpu.memory_space<vmem>>, vector<16x32xf32>
    %c0_1 = arith.constant 0 : index
    %c0_2 = arith.constant 0 : index
    %1 = vector.load %arg5[%c0_1, %c0_2] : memref<32x128xf32, #tpu.memory_space<vmem>>, vector<1x32xf32>
    %c1 = arith.constant 1 : index
    %c0_3 = arith.constant 0 : index
    %2 = vector.load %arg5[%c1, %c0_3] : memref<32x128xf32, #tpu.memory_space<vmem>>, vector<1x32xf32>
    %cst = arith.constant dense<0.000000e+00> : vector<16xf32>
    %3 = vector.multi_reduction <add>, %0, %cst [1] : vector<16x32xf32> to vector<16xf32>
    %4 = vector.shape_cast %3 : vector<16xf32> to vector<16x1xf32>
    %cst_4 = arith.constant 3.200000e+01 : f32
    %5 = vector.broadcast %cst_4 : f32 to vector<16x1xf32>
    %6 = arith.divf %4, %5 : vector<16x1xf32>
    %7 = vector.broadcast %6 : vector<16x1xf32> to vector<16x32xf32>
    %8 = arith.subf %0, %7 : vector<16x32xf32>
    %9 = arith.mulf %8, %8 : vector<16x32xf32>
    %cst_5 = arith.constant dense<0.000000e+00> : vector<16xf32>
    %10 = vector.multi_reduction <add>, %9, %cst_5 [1] : vector<16x32xf32> to vector<16xf32>
    %11 = vector.shape_cast %10 : vector<16xf32> to vector<16x1xf32>
    %cst_6 = arith.constant 3.200000e+01 : f32
    %12 = vector.broadcast %cst_6 : f32 to vector<16x1xf32>
    %13 = arith.divf %11, %12 : vector<16x1xf32>
    %14 = vector.broadcast %6 : vector<16x1xf32> to vector<16x32xf32>
    %15 = arith.subf %0, %14 : vector<16x32xf32>
    %cst_7 = arith.constant 9.99999997E-7 : f32
    %16 = vector.broadcast %cst_7 : f32 to vector<16x1xf32>
    %17 = arith.addf %13, %16 : vector<16x1xf32>
    %18 = math.rsqrt %17 : vector<16x1xf32>
    %19 = vector.broadcast %18 : vector<16x1xf32> to vector<16x32xf32>
    %20 = arith.mulf %15, %19 : vector<16x32xf32>
    %21 = vector.broadcast %1 : vector<1x32xf32> to vector<16x32xf32>
    %22 = arith.mulf %20, %21 : vector<16x32xf32>
    %23 = vector.broadcast %2 : vector<1x32xf32> to vector<16x32xf32>
    %24 = arith.addf %22, %23 : vector<16x32xf32>
    %c0_8 = arith.constant 0 : index
    %c0_9 = arith.constant 0 : index
    %25 = vector.load %arg1[%c0_8, %c0_9] : memref<32x192xf32, #tpu.memory_space<vmem>>, vector<32x192xf32>
    %cst_10 = arith.constant dense<0.000000e+00> : vector<16x192xf32>
    %26 = tpu.matmul %24, %25, %cst_10 {dimension_numbers = #tpu.dot_dimension_numbers<[1], [0], [0], [1], [0, 0, 1, 1], [], []>} : vector<16x32xf32>, vector<32x192xf32>, vector<16x192xf32> -> vector<16x192xf32>
    %27 = vector.extract_strided_slice %26 {offsets = [0, 0], sizes = [16, 64], strides = [1, 1]} : vector<16x192xf32> to vector<16x64xf32>
    %c2 = arith.constant 2 : index
    %c0_11 = arith.constant 0 : index
    %28 = vector.load %arg5[%c2, %c0_11] : memref<32x128xf32, #tpu.memory_space<vmem>>, vector<1x64xf32>
    %29 = vector.broadcast %28 : vector<1x64xf32> to vector<16x64xf32>
    %30 = arith.addf %27, %29 : vector<16x64xf32>
    %c16 = arith.constant 16 : index
    %c0_12 = arith.constant 0 : index
    %31 = vector.load %arg5[%c16, %c0_12] : memref<32x128xf32, #tpu.memory_space<vmem>>, vector<16x16xf32>
    %cst_13 = arith.constant 0.000000e+00 : f32
    %32 = vector.broadcast %cst_13 : f32 to vector<16x32xf32>
    %33 = vector.extract_strided_slice %30 {offsets = [0, 0], sizes = [16, 8], strides = [1, 1]} : vector<16x64xf32> to vector<16x8xf32>
    %34 = vector.extract_strided_slice %30 {offsets = [0, 32], sizes = [16, 8], strides = [1, 1]} : vector<16x64xf32> to vector<16x8xf32>
    %cst_14 = arith.constant dense<0.000000e+00> : vector<16x16xf32>
    %35 = tpu.matmul %33, %34, %cst_14 {dimension_numbers = #tpu.dot_dimension_numbers<[1], [1], [0], [0], [0, 0, 1, 0], [], []>} : vector<16x8xf32>, vector<16x8xf32>, vector<16x16xf32> -> vector<16x16xf32>
    %36 = arith.addf %35, %31 : vector<16x16xf32>
    %cst_15 = arith.constant dense<0xFF800000> : vector<16xf32>
    %37 = vector.multi_reduction <maximumf>, %36, %cst_15 [1] : vector<16x16xf32> to vector<16xf32>
    %38 = vector.shape_cast %37 : vector<16xf32> to vector<16x1xf32>
    %39 = vector.broadcast %38 : vector<16x1xf32> to vector<16x16xf32>
    %40 = arith.subf %36, %39 : vector<16x16xf32>
    %41 = math.exp %40 : vector<16x16xf32>
    %cst_16 = arith.constant dense<0.000000e+00> : vector<16xf32>
    %42 = vector.multi_reduction <add>, %41, %cst_16 [1] : vector<16x16xf32> to vector<16xf32>
    %43 = vector.shape_cast %42 : vector<16xf32> to vector<16x1xf32>
    %44 = tpu.reciprocal %43 {approx = true} : vector<16x1xf32> -> vector<16x1xf32>
    %45 = vector.broadcast %44 : vector<16x1xf32> to vector<16x16xf32>
    %46 = arith.mulf %41, %45 : vector<16x16xf32>
    %47 = vector.extract_strided_slice %26 {offsets = [0, 64], sizes = [16, 32], strides = [1, 1]} : vector<16x192xf32> to vector<16x32xf32>
    %cst_17 = arith.constant dense<0.000000e+00> : vector<16x32xf32>
    %48 = tpu.matmul %46, %47, %cst_17 {dimension_numbers = #tpu.dot_dimension_numbers<[1], [0], [0], [1], [0, 0, 1, 1], [], []>} : vector<16x16xf32>, vector<16x32xf32>, vector<16x32xf32> -> vector<16x32xf32>
    %49 = arith.addf %32, %48 : vector<16x32xf32>
    %50 = vector.extract_strided_slice %30 {offsets = [0, 8], sizes = [16, 8], strides = [1, 1]} : vector<16x64xf32> to vector<16x8xf32>
    %51 = vector.extract_strided_slice %30 {offsets = [0, 40], sizes = [16, 8], strides = [1, 1]} : vector<16x64xf32> to vector<16x8xf32>
    %cst_18 = arith.constant dense<0.000000e+00> : vector<16x16xf32>
    %52 = tpu.matmul %50, %51, %cst_18 {dimension_numbers = #tpu.dot_dimension_numbers<[1], [1], [0], [0], [0, 0, 1, 0], [], []>} : vector<16x8xf32>, vector<16x8xf32>, vector<16x16xf32> -> vector<16x16xf32>
    %53 = arith.addf %52, %31 : vector<16x16xf32>
    %cst_19 = arith.constant dense<0xFF800000> : vector<16xf32>
    %54 = vector.multi_reduction <maximumf>, %53, %cst_19 [1] : vector<16x16xf32> to vector<16xf32>
    %55 = vector.shape_cast %54 : vector<16xf32> to vector<16x1xf32>
    %56 = vector.broadcast %55 : vector<16x1xf32> to vector<16x16xf32>
    %57 = arith.subf %53, %56 : vector<16x16xf32>
    %58 = math.exp %57 : vector<16x16xf32>
    %cst_20 = arith.constant dense<0.000000e+00> : vector<16xf32>
    %59 = vector.multi_reduction <add>, %58, %cst_20 [1] : vector<16x16xf32> to vector<16xf32>
    %60 = vector.shape_cast %59 : vector<16xf32> to vector<16x1xf32>
    %61 = tpu.reciprocal %60 {approx = true} : vector<16x1xf32> -> vector<16x1xf32>
    %62 = vector.broadcast %61 : vector<16x1xf32> to vector<16x16xf32>
    %63 = arith.mulf %58, %62 : vector<16x16xf32>
    %64 = vector.extract_strided_slice %26 {offsets = [0, 96], sizes = [16, 32], strides = [1, 1]} : vector<16x192xf32> to vector<16x32xf32>
    %cst_21 = arith.constant dense<0.000000e+00> : vector<16x32xf32>
    %65 = tpu.matmul %63, %64, %cst_21 {dimension_numbers = #tpu.dot_dimension_numbers<[1], [0], [0], [1], [0, 0, 1, 1], [], []>} : vector<16x16xf32>, vector<16x32xf32>, vector<16x32xf32> -> vector<16x32xf32>
    %66 = arith.addf %49, %65 : vector<16x32xf32>
    %67 = vector.extract_strided_slice %30 {offsets = [0, 16], sizes = [16, 8], strides = [1, 1]} : vector<16x64xf32> to vector<16x8xf32>
    %68 = vector.extract_strided_slice %30 {offsets = [0, 48], sizes = [16, 8], strides = [1, 1]} : vector<16x64xf32> to vector<16x8xf32>
    %cst_22 = arith.constant dense<0.000000e+00> : vector<16x16xf32>
    %69 = tpu.matmul %67, %68, %cst_22 {dimension_numbers = #tpu.dot_dimension_numbers<[1], [1], [0], [0], [0, 0, 1, 0], [], []>} : vector<16x8xf32>, vector<16x8xf32>, vector<16x16xf32> -> vector<16x16xf32>
    %70 = arith.addf %69, %31 : vector<16x16xf32>
    %cst_23 = arith.constant dense<0xFF800000> : vector<16xf32>
    %71 = vector.multi_reduction <maximumf>, %70, %cst_23 [1] : vector<16x16xf32> to vector<16xf32>
    %72 = vector.shape_cast %71 : vector<16xf32> to vector<16x1xf32>
    %73 = vector.broadcast %72 : vector<16x1xf32> to vector<16x16xf32>
    %74 = arith.subf %70, %73 : vector<16x16xf32>
    %75 = math.exp %74 : vector<16x16xf32>
    %cst_24 = arith.constant dense<0.000000e+00> : vector<16xf32>
    %76 = vector.multi_reduction <add>, %75, %cst_24 [1] : vector<16x16xf32> to vector<16xf32>
    %77 = vector.shape_cast %76 : vector<16xf32> to vector<16x1xf32>
    %78 = tpu.reciprocal %77 {approx = true} : vector<16x1xf32> -> vector<16x1xf32>
    %79 = vector.broadcast %78 : vector<16x1xf32> to vector<16x16xf32>
    %80 = arith.mulf %75, %79 : vector<16x16xf32>
    %81 = vector.extract_strided_slice %26 {offsets = [0, 128], sizes = [16, 32], strides = [1, 1]} : vector<16x192xf32> to vector<16x32xf32>
    %cst_25 = arith.constant dense<0.000000e+00> : vector<16x32xf32>
    %82 = tpu.matmul %80, %81, %cst_25 {dimension_numbers = #tpu.dot_dimension_numbers<[1], [0], [0], [1], [0, 0, 1, 1], [], []>} : vector<16x16xf32>, vector<16x32xf32>, vector<16x32xf32> -> vector<16x32xf32>
    %83 = arith.addf %66, %82 : vector<16x32xf32>
    %84 = vector.extract_strided_slice %30 {offsets = [0, 24], sizes = [16, 8], strides = [1, 1]} : vector<16x64xf32> to vector<16x8xf32>
    %85 = vector.extract_strided_slice %30 {offsets = [0, 56], sizes = [16, 8], strides = [1, 1]} : vector<16x64xf32> to vector<16x8xf32>
    %cst_26 = arith.constant dense<0.000000e+00> : vector<16x16xf32>
    %86 = tpu.matmul %84, %85, %cst_26 {dimension_numbers = #tpu.dot_dimension_numbers<[1], [1], [0], [0], [0, 0, 1, 0], [], []>} : vector<16x8xf32>, vector<16x8xf32>, vector<16x16xf32> -> vector<16x16xf32>
    %87 = arith.addf %86, %31 : vector<16x16xf32>
    %cst_27 = arith.constant dense<0xFF800000> : vector<16xf32>
    %88 = vector.multi_reduction <maximumf>, %87, %cst_27 [1] : vector<16x16xf32> to vector<16xf32>
    %89 = vector.shape_cast %88 : vector<16xf32> to vector<16x1xf32>
    %90 = vector.broadcast %89 : vector<16x1xf32> to vector<16x16xf32>
    %91 = arith.subf %87, %90 : vector<16x16xf32>
    %92 = math.exp %91 : vector<16x16xf32>
    %cst_28 = arith.constant dense<0.000000e+00> : vector<16xf32>
    %93 = vector.multi_reduction <add>, %92, %cst_28 [1] : vector<16x16xf32> to vector<16xf32>
    %94 = vector.shape_cast %93 : vector<16xf32> to vector<16x1xf32>
    %95 = tpu.reciprocal %94 {approx = true} : vector<16x1xf32> -> vector<16x1xf32>
    %96 = vector.broadcast %95 : vector<16x1xf32> to vector<16x16xf32>
    %97 = arith.mulf %92, %96 : vector<16x16xf32>
    %98 = vector.extract_strided_slice %26 {offsets = [0, 160], sizes = [16, 32], strides = [1, 1]} : vector<16x192xf32> to vector<16x32xf32>
    %cst_29 = arith.constant dense<0.000000e+00> : vector<16x32xf32>
    %99 = tpu.matmul %97, %98, %cst_29 {dimension_numbers = #tpu.dot_dimension_numbers<[1], [0], [0], [1], [0, 0, 1, 1], [], []>} : vector<16x16xf32>, vector<16x32xf32>, vector<16x32xf32> -> vector<16x32xf32>
    %100 = arith.addf %83, %99 : vector<16x32xf32>
    %c3 = arith.constant 3 : index
    %c0_30 = arith.constant 0 : index
    %101 = vector.load %arg5[%c3, %c0_30] : memref<32x128xf32, #tpu.memory_space<vmem>>, vector<1x32xf32>
    %102 = vector.broadcast %101 : vector<1x32xf32> to vector<16x32xf32>
    %103 = arith.addf %100, %102 : vector<16x32xf32>
    %104 = arith.addf %0, %103 : vector<16x32xf32>
    %c4 = arith.constant 4 : index
    %c0_31 = arith.constant 0 : index
    %105 = vector.load %arg5[%c4, %c0_31] : memref<32x128xf32, #tpu.memory_space<vmem>>, vector<1x32xf32>
    %c5 = arith.constant 5 : index
    %c0_32 = arith.constant 0 : index
    %106 = vector.load %arg5[%c5, %c0_32] : memref<32x128xf32, #tpu.memory_space<vmem>>, vector<1x32xf32>
    %cst_33 = arith.constant dense<0.000000e+00> : vector<16xf32>
    %107 = vector.multi_reduction <add>, %104, %cst_33 [1] : vector<16x32xf32> to vector<16xf32>
    %108 = vector.shape_cast %107 : vector<16xf32> to vector<16x1xf32>
    %cst_34 = arith.constant 3.200000e+01 : f32
    %109 = vector.broadcast %cst_34 : f32 to vector<16x1xf32>
    %110 = arith.divf %108, %109 : vector<16x1xf32>
    %111 = vector.broadcast %110 : vector<16x1xf32> to vector<16x32xf32>
    %112 = arith.subf %104, %111 : vector<16x32xf32>
    %113 = arith.mulf %112, %112 : vector<16x32xf32>
    %cst_35 = arith.constant dense<0.000000e+00> : vector<16xf32>
    %114 = vector.multi_reduction <add>, %113, %cst_35 [1] : vector<16x32xf32> to vector<16xf32>
    %115 = vector.shape_cast %114 : vector<16xf32> to vector<16x1xf32>
    %cst_36 = arith.constant 3.200000e+01 : f32
    %116 = vector.broadcast %cst_36 : f32 to vector<16x1xf32>
    %117 = arith.divf %115, %116 : vector<16x1xf32>
    %118 = vector.broadcast %110 : vector<16x1xf32> to vector<16x32xf32>
    %119 = arith.subf %104, %118 : vector<16x32xf32>
    %cst_37 = arith.constant 9.99999974E-6 : f32
    %120 = vector.broadcast %cst_37 : f32 to vector<16x1xf32>
    %121 = arith.addf %117, %120 : vector<16x1xf32>
    %122 = math.rsqrt %121 : vector<16x1xf32>
    %123 = vector.broadcast %122 : vector<16x1xf32> to vector<16x32xf32>
    %124 = arith.mulf %119, %123 : vector<16x32xf32>
    %125 = vector.broadcast %105 : vector<1x32xf32> to vector<16x32xf32>
    %126 = arith.mulf %124, %125 : vector<16x32xf32>
    %127 = vector.broadcast %106 : vector<1x32xf32> to vector<16x32xf32>
    %128 = arith.addf %126, %127 : vector<16x32xf32>
    %c0_38 = arith.constant 0 : index
    %c0_39 = arith.constant 0 : index
    %129 = vector.load %arg2[%c0_38, %c0_39] : memref<32x128xf32, #tpu.memory_space<vmem>>, vector<32x128xf32>
    %cst_40 = arith.constant dense<0.000000e+00> : vector<16x128xf32>
    %130 = tpu.matmul %128, %129, %cst_40 {dimension_numbers = #tpu.dot_dimension_numbers<[1], [0], [0], [1], [0, 0, 1, 1], [], []>} : vector<16x32xf32>, vector<32x128xf32>, vector<16x128xf32> -> vector<16x128xf32>
    %c6 = arith.constant 6 : index
    %c0_41 = arith.constant 0 : index
    %131 = vector.load %arg5[%c6, %c0_41] : memref<32x128xf32, #tpu.memory_space<vmem>>, vector<1x128xf32>
    %132 = vector.broadcast %131 : vector<1x128xf32> to vector<16x128xf32>
    %133 = arith.addf %130, %132 : vector<16x128xf32>
    %cst_42 = arith.constant 5.000000e-01 : f32
    %134 = vector.broadcast %cst_42 : f32 to vector<16x128xf32>
    %135 = arith.mulf %134, %133 : vector<16x128xf32>
    %cst_43 = arith.constant 0.707106769 : f32
    %136 = vector.broadcast %cst_43 : f32 to vector<16x128xf32>
    %137 = arith.mulf %133, %136 : vector<16x128xf32>
    %138 = math.erf %137 : vector<16x128xf32>
    %cst_44 = arith.constant 1.000000e+00 : f32
    %139 = vector.broadcast %cst_44 : f32 to vector<16x128xf32>
    %140 = arith.addf %139, %138 : vector<16x128xf32>
    %141 = arith.mulf %135, %140 : vector<16x128xf32>
    %c0_45 = arith.constant 0 : index
    %c0_46 = arith.constant 0 : index
    %142 = vector.load %arg3[%c0_45, %c0_46] : memref<128x32xf32, #tpu.memory_space<vmem>>, vector<128x32xf32>
    %cst_47 = arith.constant dense<0.000000e+00> : vector<16x32xf32>
    %143 = tpu.matmul %141, %142, %cst_47 {dimension_numbers = #tpu.dot_dimension_numbers<[1], [0], [0], [1], [0, 0, 1, 1], [], []>} : vector<16x128xf32>, vector<128x32xf32>, vector<16x32xf32> -> vector<16x32xf32>
    %c7 = arith.constant 7 : index
    %c0_48 = arith.constant 0 : index
    %144 = vector.load %arg5[%c7, %c0_48] : memref<32x128xf32, #tpu.memory_space<vmem>>, vector<1x32xf32>
    %145 = vector.broadcast %144 : vector<1x32xf32> to vector<16x32xf32>
    %146 = arith.addf %143, %145 : vector<16x32xf32>
    %c8 = arith.constant 8 : index
    %c0_49 = arith.constant 0 : index
    %147 = vector.load %arg5[%c8, %c0_49] : memref<32x128xf32, #tpu.memory_space<vmem>>, vector<1x32xf32>
    %c9 = arith.constant 9 : index
    %c0_50 = arith.constant 0 : index
    %148 = vector.load %arg5[%c9, %c0_50] : memref<32x128xf32, #tpu.memory_space<vmem>>, vector<1x32xf32>
    %cst_51 = arith.constant dense<0.000000e+00> : vector<16xf32>
    %149 = vector.multi_reduction <add>, %128, %cst_51 [1] : vector<16x32xf32> to vector<16xf32>
    %150 = vector.shape_cast %149 : vector<16xf32> to vector<16x1xf32>
    %cst_52 = arith.constant 3.200000e+01 : f32
    %151 = vector.broadcast %cst_52 : f32 to vector<16x1xf32>
    %152 = arith.divf %150, %151 : vector<16x1xf32>
    %153 = vector.broadcast %152 : vector<16x1xf32> to vector<16x32xf32>
    %154 = arith.subf %128, %153 : vector<16x32xf32>
    %155 = arith.mulf %154, %154 : vector<16x32xf32>
    %cst_53 = arith.constant dense<0.000000e+00> : vector<16xf32>
    %156 = vector.multi_reduction <add>, %155, %cst_53 [1] : vector<16x32xf32> to vector<16xf32>
    %157 = vector.shape_cast %156 : vector<16xf32> to vector<16x1xf32>
    %cst_54 = arith.constant 3.200000e+01 : f32
    %158 = vector.broadcast %cst_54 : f32 to vector<16x1xf32>
    %159 = arith.divf %157, %158 : vector<16x1xf32>
    %160 = vector.broadcast %152 : vector<16x1xf32> to vector<16x32xf32>
    %161 = arith.subf %128, %160 : vector<16x32xf32>
    %cst_55 = arith.constant 9.99999974E-6 : f32
    %162 = vector.broadcast %cst_55 : f32 to vector<16x1xf32>
    %163 = arith.addf %159, %162 : vector<16x1xf32>
    %164 = math.rsqrt %163 : vector<16x1xf32>
    %165 = vector.broadcast %164 : vector<16x1xf32> to vector<16x32xf32>
    %166 = arith.mulf %161, %165 : vector<16x32xf32>
    %167 = vector.broadcast %147 : vector<1x32xf32> to vector<16x32xf32>
    %168 = arith.mulf %166, %167 : vector<16x32xf32>
    %169 = vector.broadcast %148 : vector<1x32xf32> to vector<16x32xf32>
    %170 = arith.addf %168, %169 : vector<16x32xf32>
    %c0_56 = arith.constant 0 : index
    %c0_57 = arith.constant 0 : index
    %171 = vector.load %arg4[%c0_56, %c0_57] : memref<40x128xf32, #tpu.memory_space<vmem>>, vector<32x8xf32>
    %cst_58 = arith.constant dense<0.000000e+00> : vector<16x8xf32>
    %172 = tpu.matmul %170, %171, %cst_58 {dimension_numbers = #tpu.dot_dimension_numbers<[1], [0], [0], [1], [0, 0, 1, 1], [], []>} : vector<16x32xf32>, vector<32x8xf32>, vector<16x8xf32> -> vector<16x8xf32>
    %c10 = arith.constant 10 : index
    %c0_59 = arith.constant 0 : index
    %173 = vector.load %arg5[%c10, %c0_59] : memref<32x128xf32, #tpu.memory_space<vmem>>, vector<1x8xf32>
    %174 = vector.broadcast %173 : vector<1x8xf32> to vector<16x8xf32>
    %175 = arith.addf %172, %174 : vector<16x8xf32>
    %cst_60 = arith.constant 0.000000e+00 : f32
    %176 = vector.broadcast %cst_60 : f32 to vector<16x8xf32>
    %177 = arith.maximumf %175, %176 : vector<16x8xf32>
    %c32 = arith.constant 32 : index
    %c0_61 = arith.constant 0 : index
    %178 = vector.load %arg4[%c32, %c0_61] : memref<40x128xf32, #tpu.memory_space<vmem>>, vector<8x32xf32>
    %cst_62 = arith.constant dense<0.000000e+00> : vector<16x32xf32>
    %179 = tpu.matmul %177, %178, %cst_62 {dimension_numbers = #tpu.dot_dimension_numbers<[1], [0], [0], [1], [0, 0, 1, 1], [], []>} : vector<16x8xf32>, vector<8x32xf32>, vector<16x32xf32> -> vector<16x32xf32>
    %c11 = arith.constant 11 : index
    %c0_63 = arith.constant 0 : index
    %180 = vector.load %arg5[%c11, %c0_63] : memref<32x128xf32, #tpu.memory_space<vmem>>, vector<1x32xf32>
    %181 = vector.broadcast %180 : vector<1x32xf32> to vector<16x32xf32>
    %182 = arith.addf %179, %181 : vector<16x32xf32>
    %183 = arith.addf %104, %146 : vector<16x32xf32>
    %184 = arith.addf %183, %182 : vector<16x32xf32>
    %c0_64 = arith.constant 0 : index
    %c0_65 = arith.constant 0 : index
    %185 = vector.load %arg6[%c0_64, %c0_65] : memref<16x32xf32, #tpu.memory_space<vmem>>, vector<16x32xf32>
    tpu.vector_store %arg6[%c0_64, %c0_65], %184 {strides = array<i32>} : memref<16x32xf32, #tpu.memory_space<vmem>>, vector<16x32xf32>,
    return
  }
}

</mosaic_0001>

<bundles_post_ra>
// kernel: tpu_custom_call.1
= control target key start
LH: loop header
LB: loop body
LE: loop exit
PB: predicated region body
PF: predicated region fallthrough
CT: control target
= control target key end

     0   :  { %11 = vsyncpa [#allocation3], 0  ;;  %s2152_s0 = inlined_call_operand.hbm [shape: f32[16,32], index: 0, kind: input, shape index: {}]   ;;  %s2153_s1 = inlined_call_operand.vmem [shape: f32[32,192], index: 1, kind: input, shape index: {}]   ;;  %s2154_s2 = inlined_call_operand.vmem [shape: f32[32,128], index: 2, kind: input, shape index: {}]   ;;  %s2155_s3 = inlined_call_operand.vmem [shape: f32[128,32], index: 3, kind: input, shape index: {}]   ;;  %s2156_s4 = inlined_call_operand.vmem [shape: f32[40,128], index: 4, kind: input, shape index: {}]   ;;  %s2157_s5 = inlined_call_operand.vmem [shape: f32[32,128], index: 5, kind: input, shape index: {}]   ;;  %s2158_s6 = inlined_call_operand.hbm [shape: f32[16,32], index: 6, kind: output, shape index: {}]  }
   0x1   :  { %12 = vsyncpa [#allocation4], 0  ;;  %s1804_s21 = smov [#allocation2]  }
   0x2   :  { %s18_s22 = sshll.u32 %s1804_s21, 4  ;;  %s19_s22 = int_to_ptr.vmem [resolvable:$true] %s18_s22 }
   0x3   :  { %s1768_s23 = scalar_lea.vmem %s19_s22, 256  ;;  %p1773_p1 = scmp.lt.s32.totalorder %s19_s22, %s19_s22 }
   0x4   :  { %p1769_p0 = scmp.ne.s32.totalorder %s19_s22, %s1768_s23  ;;  %p1774_p2 = scmp.lt.s32.totalorder %s1768_s23, %s1768_s23 }
   0x6   :  { %p1775_p3 = por %p1774_p2, %p1773_p1 }
   0x8   :  { %p1776_p4 = pnand %p1775_p3, %p1769_p0 }
   0xa   :  { %1779 = shalt.err (!%p1776_p4)
}
   0xb   :  { %s1805_s24 = smov 128   ;;  %s1806_s25 = smov 8  }
   0xc   :  { %24 = dma.hbm_to_vmem [thread:$0]  %s2152_s0, 256, %s19_s22, [#allocation3], %s1805_s24, %s1805_s24, %s1806_s25  }
   0xd   :  { %1800 = dma.done.wait [#allocation3], 256  }
   0xe   :  { %1801 = vsyncadd [#allocation3], 4294967040  ;;  %vm42_vm0 = vcmask 261120   ;;  %v1859_v0 = vld [vmem:[#allocation2] sm:$0xff]  ;;  %v1861_v1 = vld [vmem:[#allocation2 + $0x8] sm:$0xff]  ;;  %v1807_v18 = vmov 0.0  }
   0xf   :  { %v43_v2 = vsel %vm42_vm0, %v1859_v0, 0.0  ;;  %v46_v3 = vsel %vm42_vm0, %v1861_v1, 0.0  ;;  %v89_v14 = vld [vmem:[%s2153_s1 + $0x38] sm:$0xff]  ;;  %v88_v15 = vld [vmem:[%s2153_s1 + $0x30] sm:$0xff]  ;;  %v87_v16 = vld [vmem:[%s2153_s1 + $0x28] sm:$0xff]  ;;  %160 = vmatprep.mubr.f32.mxu0 %v1807_v18  ;;  %vm188_vm1 = vcmask 64512  }
  0x10   :  { %44 = vadd.xlane.f32.xlu0 %v43_v2  ;;  %120 = vmatprep.subr.mxu0 %v89_v14  ;;  %v86_v17 = vld [vmem:[%s2153_s1 + $0x20] sm:$0xff]  ;;  %v85_v19 = vld [vmem:[%s2153_s1 + $0x18] sm:$0xff]  ;;  %v84_v20 = vld [vmem:[%s2153_s1 + $0x10] sm:$0xff]  ;;  %s1808_s26 = smov 96   ;;  %s1809_s27 = smov 88   ;;  %vm272_vm2 = vcmask 130048  }
  0x11   :  { %121 = vmatpush1.msra.mxu0 %v88_v15  ;;  %v83_v21 = vld [vmem:[%s2153_s1 + $0x8] sm:$0xff]  ;;  %v82_v22 = vld [vmem:[%s2153_s1] sm:$0xff]  ;;  %s1810_s0 = smov 120   ;;  %s1811_s28 = smov 80   ;;  %v1955_v57 = vld [vmem:[%s2157_s5 + $0x10] sm:$0xff] }
  0x12   :  { %122 = vmatprep.subr.mxu0 %v87_v16  ;;  %v1471_v30 = vld [vmem:[%s2157_s5] ss:$0 sm:$0xff]  ;;  %v1472_v32 = vld [vmem:[%s2157_s5 + $0x1] ss:$0 sm:$0xff]  ;;  %v1475_v39 = vld [vmem:[%s2157_s5 + $0x2] ss:$0 sm:$0xff] }
  0x13   :  { %123 = vmatpush1.msra.mxu0 %v86_v17  ;;  %s1812_s29 = smov 112   ;;  %v1962_v61 = vld [vmem:[%s2157_s5 + $0x18] sm:$0xff]  ;;  %s1813_s10 = smov 32  }
  0x14   :  { %47 = vadd.xlane.f32.xlu0 %v46_v3  ;;  %124 = vmatprep.subr.mxu0 %v85_v19  ;;  %s1814_s11 = smov 64   ;;  %s1815_s12 = smov 72  }
  0x15   :  { %125 = vmatpush1.msra.mxu0 %v84_v20  ;;  %s1816_s13 = smov 104  }
  0x16   :  { %126 = vmatprep.subr.mxu0 %v83_v21 }
  0x17   :  { %127 = vmatpush1.msra.mxu0 %v82_v22 }
  0x99   :  { %v45_v4 = vpop.xlane.xlu0 %44 }
  0x9a   :  { %v50_v5 = vmul.f32 0.03125, %v45_v4 }
  0x9c   :  { %v52_v6 = vsub.f32 %v1859_v0, %v50_v5 }
  0x9d   :  { %v48_v7 = vpop.xlane.xlu0 %47 }
  0x9e   :  { %v51_v8 = vmul.f32 0.03125, %v48_v7  ;;  %v54_v9 = vmul.f32 %v52_v6, %v52_v6 }
  0xa0   :  { %v53_v10 = vsub.f32 %v1861_v1, %v51_v8  ;;  %v56_v11 = vsel %vm42_vm0, %v54_v9, 0.0 }
  0xa1   :  { %57 = vadd.xlane.f32.xlu1 %v56_v11 }
  0xa2   :  { %v55_v12 = vmul.f32 %v53_v10, %v53_v10 }
  0xa4   :  { %v59_v13 = vsel %vm42_vm0, %v55_v12, 0.0 }
  0xa5   :  { %60 = vadd.xlane.f32.xlu1 %v59_v13 }
 0x12a   :  { %v58_v23 = vpop.xlane.xlu1 %57 }
 0x12b   :  { %v62_v24 = vmul.f32 0.03125, %v58_v23 }
 0x12d   :  { %v64_v25 = vadd.f32 1e-06, %v62_v24 }
 0x12e   :  { %v61_v26 = vpop.xlane.xlu1 %60 }
 0x12f   :  { %1712 = vrsqrt.f32 %v64_v25  ;;  %v63_v27 = vmul.f32 0.03125, %v61_v26 }
 0x131   :  { %v65_v28 = vadd.f32 1e-06, %v63_v27 }
 0x133   :  { %1714 = vrsqrt.f32 %v65_v28 }
 0x13c   :  { %v1713_v29 = vpop.eup %1712 }
 0x13d   :  { %v68_v31 = vmul.f32 %v1713_v29, %v52_v6 }
 0x13f   :  { %v74_v33 = vmul.f32 %v1471_v30, %v68_v31 }
 0x140   :  { %v1715_v34 = vpop.eup %1714 }
 0x141   :  { %v80_v35 = vadd.f32 %v1472_v32, %v74_v33  ;;  %v69_v36 = vmul.f32 %v1715_v34, %v53_v10 }
 0x143   :  { %1473 = vmatmul.mubr.msk.f32.vlgmr.msra.gmra.mxu0 %vm42_vm0, %v80_v35  ;;  %v75_v37 = vmul.f32 %v1471_v30, %v69_v36 }
 0x144   :  { %166 = vmatprep.mubr.f32.mxu0 %v1807_v18 }
 0x145   :  { %v81_v38 = vadd.f32 %v1472_v32, %v75_v37 }
 0x147   :  { %1474 = vmatmul.mubr.msk.f32.gmra.mxu0 %vm42_vm0, %v81_v38 }
 0x203   :  { %v1906_v40 = vpop.f32.mrf.mxu0 }
 0x204   :  { %v1909_v41 = vadd.f32 %v1475_v39, %v1906_v40 }
 0x205   :  { %v1911_v42 = vpop.f32.mrf.mxu0 }
 0x206   :  { %184 = vrot.lane.b32.xlu1 %v1909_v41, %s1808_s26  ;;  %1584 = vmatprep.mubr.msk.f32.mxu0 %vm188_vm1, %v1909_v41 }
 0x207   :  { %v1917_v43 = vpop.f32.mrf.mxu0 }
 0x208   :  { %v1920_v44 = vadd.f32 %v1475_v39, %v1917_v43 }
 0x209   :  { %v1950_v55 = vpop.f32.mrf.mxu0 }
 0x20a   :  { %301 = vrot.lane.b32.xlu1 %v1920_v44, %s1809_s27  ;;  %186 = vrot.lane.b32.xlu0 %v1920_v44, %s1808_s26 }
 0x20e   :  { %299 = vrot.lane.b32.xlu1 %v1909_v41, %s1809_s27  ;;  %295 = vrot.lane.b32.xlu0 %v1909_v41, %s1810_s0 }
 0x212   :  { %297 = vrot.lane.b32.xlu1 %v1920_v44, %s1810_s0  ;;  %590 = vrot.lane.b32.xlu0 %v1920_v44, %s1811_s28 }
 0x216   :  { %588 = vrot.lane.b32.xlu1 %v1909_v41, %s1811_s28  ;;  %584 = vrot.lane.b32.xlu0 %v1909_v41, %s1812_s29 }
 0x21a   :  { %586 = vrot.lane.b32.xlu1 %v1920_v44, %s1812_s29  ;;  %s1817_s29 = smov [#allocation5]  }
 0x21b   :  { %s1459_s30 = sshll.u32 %s1817_s29, 4  ;;  %s1460_s30 = int_to_ptr.vmem [resolvable:$true] %s1459_s30 }
 0x21c   :  { %s1780_s7 = scalar_lea.vmem %s1460_s30, 256  ;;  %p1785_p6 = scmp.lt.s32.totalorder %s1460_s30, %s1460_s30 }
 0x21d   :  { %p1781_p5 = scmp.ne.s32.totalorder %s1460_s30, %s1780_s7  ;;  %p1786_p7 = scmp.lt.s32.totalorder %s1780_s7, %s1780_s7 }
 0x21f   :  { %p1787_p8 = por %p1786_p7, %p1785_p6 }
 0x221   :  { %p1788_p9 = pnand %p1787_p8, %p1781_p5 }
 0x278   :  { %v185_v45 = vpop.permute.xlu1 %184 }
 0x27c   :  { %v187_v46 = vpop.permute.xlu0 %186  ;;  %v302_v47 = vpop.permute.xlu1 %301 }
 0x27d   :  { %1580 = vmatprep.subr.msk.mxu0 %vm188_vm1, %v187_v46 }
 0x27e   :  { %1581 = vmatpush3.xpose.msk.msra.mxu0 %vm188_vm1, %v187_v46 }
 0x27f   :  { %1582 = vmatprep.subr.msk.mxu0 %vm188_vm1, %v185_v45 }
 0x280   :  { %v296_v48 = vpop.permute.xlu0 %295  ;;  %v300_v49 = vpop.permute.xlu1 %299 }
 0x282   :  { %1583 = vmatpush3.xpose.msk.msra.mxu0 %vm188_vm1, %v185_v45 }
 0x283   :  { %1587 = vmatprep.subr.msk.mxu0 %vm188_vm1, %v302_v47 }
 0x284   :  { %v591_v50 = vpop.permute.xlu0 %590  ;;  %v298_v51 = vpop.permute.xlu1 %297 }
 0x285   :  { %1585 = vmatmul.mubr.msk.f32.vlgmr.msra.gmra.mxu0 %vm188_vm1, %v1920_v44 }
 0x286   :  { %1588 = vmatpush3.xpose.msk.msra.mxu0 %vm188_vm1, %v302_v47  ;;  %1591 = vmatprep.mubr.msk.f32.mxu0 %vm188_vm1, %v296_v48 }
 0x287   :  { %1589 = vmatprep.subr.msk.mxu0 %vm188_vm1, %v300_v49 }
 0x288   :  { %v585_v52 = vpop.permute.xlu0 %584  ;;  %v589_v53 = vpop.permute.xlu1 %588 }
 0x28a   :  { %1590 = vmatpush3.xpose.msk.msra.mxu0 %vm188_vm1, %v300_v49 }
 0x28b   :  { %1608 = vmatprep.subr.msk.mxu0 %vm188_vm1, %v591_v50 }
 0x28c   :  { %v587_v54 = vpop.permute.xlu1 %586 }
 0x28d   :  { %1592 = vmatmul.mubr.msk.f32.vlgmr.msra.gmra.mxu0 %vm188_vm1, %v298_v51 }
 0x28e   :  { %1609 = vmatpush3.xpose.msk.msra.mxu0 %vm188_vm1, %v591_v50  ;;  %1612 = vmatprep.mubr.msk.f32.mxu0 %vm188_vm1, %v585_v52 }
 0x28f   :  { %1610 = vmatprep.subr.msk.mxu0 %vm188_vm1, %v589_v53 }
 0x292   :  { %1611 = vmatpush3.xpose.msk.msra.mxu0 %vm188_vm1, %v589_v53 }
 0x295   :  { %1613 = vmatmul.mubr.msk.f32.vlgmr.msra.gmra.mxu0 %vm188_vm1, %v587_v54 }
 0x345   :  { %v1586_v56 = vpop.f32.mrf.mxu0 }
 0x346   :  { %v269_v5 = vadd.f32 %v1586_v56, %v1962_v61 }
 0x347   :  { %v263_v58 = vpop.f32.mrf.mxu0 }
 0x348   :  { %v264_v59 = vadd.f32 %v263_v58, %v1955_v57  ;;  %v276_v9 = vsel %vm272_vm2, %v269_v5, -inf }
 0x34a   :  { %v273_v60 = vsel %vm272_vm2, %v264_v59, -inf }
 0x34b   :  { %274 = vmax.xlane.f32.xlu0 %v273_v60 }
 0x34d   :  { %v1593_v62 = vpop.f32.mrf.mxu0 }
 0x34e   :  { %v383_v63 = vadd.f32 %v1593_v62, %v1962_v61 }
 0x34f   :  { %v377_v2 = vpop.f32.mrf.mxu0 }
 0x350   :  { %v378_v3 = vadd.f32 %v377_v2, %v1955_v57  ;;  %v389_v4 = vsel %vm272_vm2, %v383_v63, -inf }
 0x351   :  { %390 = vmax.xlane.f32.xlu1 %v389_v4 }
 0x352   :  { %v386_v6 = vsel %vm272_vm2, %v378_v3, -inf }
 0x353   :  { %387 = vmax.xlane.f32.xlu0 %v386_v6 }
 0x355   :  { %v1614_v7 = vpop.f32.mrf.mxu0 }
 0x356   :  { %v672_v8 = vadd.f32 %v1614_v7, %v1962_v61 }
 0x357   :  { %277 = vmax.xlane.f32.xlu0 %v276_v9  ;;  %v666_v10 = vpop.f32.mrf.mxu0 }
 0x358   :  { %v667_v11 = vadd.f32 %v666_v10, %v1955_v57  ;;  %v678_v12 = vsel %vm272_vm2, %v672_v8, -inf }
 0x359   :  { %679 = vmax.xlane.f32.xlu1 %v678_v12 }
 0x35a   :  { %v675_v13 = vsel %vm272_vm2, %v667_v11, -inf }
 0x35b   :  { %676 = vmax.xlane.f32.xlu0 %v675_v13 }
 0x3d4   :  { %v275_v14 = vpop.xlane.xlu0 %274 }
 0x3d5   :  { %v279_v15 = vsub.f32 %v264_v59, %v275_v14 }
 0x3d7   :  { %v281_v16 = vmul.f32 1.442695, %v279_v15 }
 0x3d9   :  { %1716 = vpow2.f32 %v281_v16 }
 0x3da   :  { %v391_v17 = vpop.xlane.xlu1 %390 }
 0x3db   :  { %v393_v20 = vsub.f32 %v383_v63, %v391_v17 }
 0x3dc   :  { %v388_v18 = vpop.xlane.xlu0 %387 }
 0x3dd   :  { %v392_v19 = vsub.f32 %v378_v3, %v388_v18  ;;  %v396_v24 = vmul.f32 1.442695, %v393_v20 }
 0x3df   :  { %v394_v21 = vmul.f32 1.442695, %v392_v19 }
 0x3e0   :  { %v278_v22 = vpop.xlane.xlu0 %277 }
 0x3e1   :  { %1718 = vpow2.f32 %v394_v21  ;;  %v280_v23 = vsub.f32 %v269_v5, %v278_v22 }
 0x3e2   :  { %v680_v37 = vpop.xlane.xlu1 %679 }
 0x3e3   :  { %v283_v25 = vmul.f32 1.442695, %v280_v23  ;;  %v682_v38 = vsub.f32 %v672_v8, %v680_v37 }
 0x3e4   :  { %v677_v34 = vpop.xlane.xlu0 %676 }
 0x3e5   :  { %1720 = vpow2.f32 %v283_v25  ;;  %v681_v35 = vsub.f32 %v667_v11, %v677_v34  ;;  %v685_v39 = vmul.f32 1.442695, %v682_v38 }
 0x3e6   :  { %v1717_v26 = vpop.eup %1716  ;;  %1722 = vpow2.f32 %v396_v24 }
 0x3e7   :  { %v285_v27 = vsel %vm272_vm2, %v1717_v26, 0.0  ;;  %v683_v36 = vmul.f32 1.442695, %v681_v35 }
 0x3e8   :  { %286 = vadd.xlane.f32.xlu0 %v285_v27 }
 0x3e9   :  { %1724 = vpow2.f32 %v683_v36 }
 0x3ea   :  { %1726 = vpow2.f32 %v685_v39 }
 0x3ee   :  { %v1719_v28 = vpop.eup %1718 }
 0x3ef   :  { %v398_v29 = vsel %vm272_vm2, %v1719_v28, 0.0 }
 0x3f0   :  { %399 = vadd.xlane.f32.xlu0 %v398_v29 }
 0x3f2   :  { %v1721_v30 = vpop.eup %1720 }
 0x3f3   :  { %v288_v31 = vsel %vm272_vm2, %v1721_v30, 0.0  ;;  %v1723_v32 = vpop.eup %1722 }
 0x3f4   :  { %289 = vadd.xlane.f32.xlu1 %v288_v31  ;;  %v401_v33 = vsel %vm272_vm2, %v1723_v32, 0.0 }
 0x3f6   :  { %v1725_v45 = vpop.eup %1724 }
 0x3f7   :  { %v687_v46 = vsel %vm272_vm2, %v1725_v45, 0.0  ;;  %v1727_v47 = vpop.eup %1726 }
 0x3f8   :  { %402 = vadd.xlane.f32.xlu1 %v401_v33  ;;  %v690_v48 = vsel %vm272_vm2, %v1727_v47, 0.0 }
 0x406   :  { %412 = vrot.lane.b32.xlu0 %v1917_v43, %s1813_s10 }
 0x409   :  { %410 = vrot.lane.b32.xlu1 %v1906_v40, %s1813_s10 }
 0x40d   :  { %499 = vrot.lane.b32.xlu1 %v1917_v43, %s1814_s11 }
 0x411   :  { %497 = vrot.lane.b32.xlu1 %v1906_v40, %s1814_s11 }
 0x425   :  { %688 = vadd.xlane.f32.xlu0 %v687_v46 }
 0x435   :  { %691 = vadd.xlane.f32.xlu1 %v690_v48 }
 0x43b   :  { %786 = vrot.lane.b32.xlu0 %v1920_v44, %s1815_s12 }
 0x43f   :  { %780 = vrot.lane.b32.xlu0 %v1909_v41, %s1816_s13 }
 0x446   :  { %784 = vrot.lane.b32.xlu1 %v1909_v41, %s1815_s12 }
 0x44a   :  { %782 = vrot.lane.b32.xlu1 %v1920_v44, %s1816_s13 }
 0x471   :  { %v287_v40 = vpop.xlane.xlu0 %286 }
 0x479   :  { %v400_v43 = vpop.xlane.xlu0 %399 }
 0x47a   :  { %1728 = vrcp.f32 %v400_v43 }
 0x47b   :  { %1730 = vrcp.f32 %v287_v40 }
 0x47d   :  { %v413_v49 = vpop.permute.xlu0 %412  ;;  %v290_v50 = vpop.xlane.xlu1 %289 }
 0x47e   :  { %1594 = vmatprep.subr.mxu1 %v413_v49 }
 0x47f   :  { %1595 = vmatpush3.msra.mxu1 %v413_v49 }
 0x481   :  { %v403_v51 = vpop.xlane.xlu1 %402 }
 0x482   :  { %1732 = vrcp.f32 %v403_v51 }
 0x483   :  { %1734 = vrcp.f32 %v290_v50 }
 0x485   :  { %v411_v52 = vpop.permute.xlu1 %410 }
 0x486   :  { %1596 = vmatprep.subr.mxu1 %v411_v52 }
 0x487   :  { %v1729_v53 = vpop.eup %1728  ;;  %1597 = vmatpush3.msra.mxu1 %v411_v52 }
 0x488   :  { %v406_v54 = vmul.f32 %v1729_v53, %v1719_v28  ;;  %v1731_v41 = vpop.eup %1730 }
 0x489   :  { %v500_v56 = vpop.permute.xlu1 %499  ;;  %v293_v60 = vmul.f32 %v1731_v41, %v1717_v26 }
 0x48a   :  { %1598 = vmatprep.mubr.msk.f32.mxu1 %vm272_vm2, %v406_v54  ;;  %1601 = vmatprep.subr.mxu1 %v500_v56 }
 0x48d   :  { %v498_v62 = vpop.permute.xlu1 %497 }
 0x48f   :  { %v1733_v44 = vpop.eup %1732 }
 0x490   :  { %v407_v58 = vmul.f32 %v1733_v44, %v1723_v32  ;;  %v1735_v59 = vpop.eup %1734 }
 0x491   :  { %v294_v63 = vmul.f32 %v1735_v59, %v1721_v30 }
 0x492   :  { %1599 = vmatmul.mubr.msk.f32.vlgmr.msra.gmra.mxu1 %vm272_vm2, %v407_v58 }
 0x493   :  { %1602 = vmatpush3.msra.mxu1 %v500_v56  ;;  %1605 = vmatprep.mubr.msk.f32.mxu1 %vm272_vm2, %v293_v60 }
 0x494   :  { %1603 = vmatprep.subr.mxu1 %v498_v62 }
 0x495   :  { %1604 = vmatpush3.msra.mxu1 %v498_v62 }
 0x496   :  { %1615 = vmatprep.subr.mxu1 %v1950_v55  ;;  %1606 = vmatmul.mubr.msk.f32.vlgmr.msra.gmra.mxu1 %vm272_vm2, %v294_v63 }
 0x497   :  { %1616 = vmatpush3.msra.mxu1 %v1950_v55 }
 0x498   :  { %1617 = vmatprep.subr.mxu1 %v1911_v42 }
 0x499   :  { %1618 = vmatpush3.msra.mxu1 %v1911_v42 }
 0x4ae   :  { %v689_v2 = vpop.xlane.xlu0 %688 }
 0x4af   :  { %1736 = vrcp.f32 %v689_v2 }
 0x4b2   :  { %v787_v3 = vpop.permute.xlu0 %786 }
 0x4b3   :  { %1622 = vmatprep.subr.msk.mxu1 %vm188_vm1, %v787_v3 }
 0x4b6   :  { %v781_v9 = vpop.permute.xlu0 %780 }
 0x4bc   :  { %v1737_v4 = vpop.eup %1736 }
 0x4bd   :  { %v695_v5 = vmul.f32 %v1737_v4, %v1725_v45  ;;  %v1035_v4 = vld [vmem:[%s2154_s2 + $0x10] sm:$0xff] }
 0x4be   :  { %v692_v6 = vpop.xlane.xlu1 %691 }
 0x4bf   :  { %1738 = vrcp.f32 %v692_v6  ;;  %1619 = vmatprep.mubr.msk.f32.mxu1 %vm272_vm2, %v695_v5  ;;  %v1034_v5 = vld [vmem:[%s2154_s2 + $0x8] sm:$0xff]  ;;  %v1033_v6 = vld [vmem:[%s2154_s2] sm:$0xff] }
 0x4c2   :  { %v785_v10 = vpop.permute.xlu1 %784 }
 0x4c6   :  { %v783_v11 = vpop.permute.xlu1 %782 }
 0x4cc   :  { %v1739_v7 = vpop.eup %1738 }
 0x4cd   :  { %v696_v8 = vmul.f32 %v1739_v7, %v1727_v47 }
 0x4cf   :  { %1620 = vmatmul.mubr.msk.f32.vlgmr.msra.gmra.mxu1 %vm272_vm2, %v696_v8 }
 0x4d0   :  { %1623 = vmatpush3.xpose.msk.msra.mxu1 %vm188_vm1, %v787_v3  ;;  %1626 = vmatprep.mubr.msk.f32.mxu1 %vm188_vm1, %v781_v9  ;;  %v1036_v3 = vld [vmem:[%s2154_s2 + $0x18] sm:$0xff] }
 0x4d1   :  { %1624 = vmatprep.subr.msk.mxu1 %vm188_vm1, %v785_v10 }
 0x4d4   :  { %1625 = vmatpush3.xpose.msk.msra.mxu1 %vm188_vm1, %v785_v10 }
 0x4d7   :  { %1627 = vmatmul.mubr.msk.f32.vlgmr.msra.gmra.mxu1 %vm188_vm1, %v783_v11 }
 0x552   :  { %v1600_v12 = vpop.f32.mrf.mxu1 }
 0x554   :  { %v488_v13 = vpop.f32.mrf.mxu1 }
 0x556   :  { %v1607_v14 = vpop.f32.mrf.mxu1 }
 0x557   :  { %v581_v15 = vadd.f32 %v1607_v14, %v1600_v12  ;;  %v1501_v14 = vld [vmem:[%s2157_s5 + $0x4] ss:$0 sm:$0xff] }
 0x558   :  { %v575_v16 = vpop.f32.mrf.mxu1 }
 0x559   :  { %v576_v17 = vadd.f32 %v575_v16, %v488_v13 }
 0x58f   :  { %v1621_v18 = vpop.f32.mrf.mxu1 }
 0x590   :  { %v779_v19 = vadd.f32 %v1621_v18, %v581_v15 }
 0x591   :  { %v769_v20 = vpop.f32.mrf.mxu1 }
 0x592   :  { %v778_v21 = vadd.f32 %v769_v20, %v576_v17  ;;  %v1502_v17 = vld [vmem:[%s2157_s5 + $0x5] ss:$0 sm:$0xff] }
 0x597   :  { %v1628_v22 = vpop.f32.mrf.mxu1 }
 0x598   :  { %v868_v23 = vadd.f32 %v1628_v22, %v1962_v61 }
 0x599   :  { %v862_v24 = vpop.f32.mrf.mxu1 }
 0x59a   :  { %v863_v25 = vadd.f32 %v862_v24, %v1955_v57  ;;  %v874_v26 = vsel %vm272_vm2, %v868_v23, -inf }
 0x59b   :  { %875 = vmax.xlane.f32.xlu1 %v874_v26  ;;  %v1147_v26 = vld [vmem:[%s2155_s3 + $0x70] sm:$0xff] }
 0x59c   :  { %v871_v27 = vsel %vm272_vm2, %v863_v25, -inf }
 0x59d   :  { %872 = vmax.xlane.f32.xlu0 %v871_v27  ;;  %v1146_v27 = vld [vmem:[%s2155_s3 + $0x68] sm:$0xff] }
 0x5ac   :  { %895 = vrot.lane.b32.xlu1 %v1911_v42, %s1808_s26 }
 0x624   :  { %v876_v28 = vpop.xlane.xlu1 %875 }
 0x625   :  { %v878_v29 = vsub.f32 %v868_v23, %v876_v28  ;;  %v1145_v28 = vld [vmem:[%s2155_s3 + $0x60] sm:$0xff] }
 0x626   :  { %v873_v30 = vpop.xlane.xlu0 %872 }
 0x627   :  { %v881_v31 = vmul.f32 1.442695, %v878_v29  ;;  %v877_v32 = vsub.f32 %v863_v25, %v873_v30  ;;  %v1148_v25 = vld [vmem:[%s2155_s3 + $0x78] sm:$0xff]  ;;  %v1143_v30 = vld [vmem:[%s2155_s3 + $0x50] sm:$0xff] }
 0x628   :  { %v896_v38 = vpop.permute.xlu1 %895  ;;  %1647 = vmatprep.subr.mxu1 %v1148_v25  ;;  %v1144_v29 = vld [vmem:[%s2155_s3 + $0x58] sm:$0xff] }
 0x629   :  { %1740 = vpow2.f32 %v881_v31  ;;  %v879_v33 = vmul.f32 1.442695, %v877_v32  ;;  %1648 = vmatpush3.msra.mxu1 %v1148_v25  ;;  %v1142_v31 = vld [vmem:[%s2155_s3 + $0x48] sm:$0xff]  ;;  %v1141_v32 = vld [vmem:[%s2155_s3 + $0x40] sm:$0xff] }
 0x62a   :  { %1649 = vmatprep.subr.mxu1 %v1147_v26  ;;  %v1509_v25 = vld [vmem:[%s2157_s5 + $0xa] ss:$0 sm:$0xff] }
 0x62b   :  { %1742 = vpow2.f32 %v879_v33  ;;  %1650 = vmatpush3.msra.mxu1 %v1147_v26  ;;  %v1140_v33 = vld [vmem:[%s2155_s3 + $0x38] sm:$0xff] }
 0x62c   :  { %1651 = vmatprep.subr.mxu1 %v1146_v27 }
 0x62d   :  { %1652 = vmatpush3.msra.mxu1 %v1146_v27 }
 0x62e   :  { %1653 = vmatprep.subr.mxu1 %v1145_v28 }
 0x62f   :  { %1654 = vmatpush3.msra.mxu1 %v1145_v28 }
 0x630   :  { %1655 = vmatprep.subr.mxu1 %v1144_v29 }
 0x631   :  { %1656 = vmatpush3.msra.mxu1 %v1144_v29 }
 0x632   :  { %1657 = vmatprep.subr.mxu1 %v1143_v30 }
 0x633   :  { %1658 = vmatpush3.msra.mxu1 %v1143_v30 }
 0x634   :  { %1659 = vmatprep.subr.mxu1 %v1142_v31 }
 0x635   :  { %1660 = vmatpush3.msra.mxu1 %v1142_v31 }
 0x636   :  { %v1741_v61 = vpop.eup %1740  ;;  %1661 = vmatprep.subr.mxu1 %v1141_v32 }
 0x637   :  { %v886_v57 = vsel %vm272_vm2, %v1741_v61, 0.0  ;;  %1662 = vmatpush3.msra.mxu1 %v1141_v32 }
 0x638   :  { %v1743_v34 = vpop.eup %1742  ;;  %887 = vadd.xlane.f32.xlu0 %v886_v57  ;;  %1663 = vmatprep.subr.mxu1 %v1140_v33  ;;  %v1138_v57 = vld [vmem:[%s2155_s3 + $0x28] sm:$0xff] }
 0x639   :  { %v883_v35 = vsel %vm272_vm2, %v1743_v34, 0.0  ;;  %1664 = vmatpush3.msra.mxu1 %v1140_v33  ;;  %v1506_v33 = vld [vmem:[%s2157_s5 + $0x7] ss:$0 sm:$0xff] }
 0x63c   :  { %884 = vadd.xlane.f32.xlu0 %v883_v35  ;;  %v1136_v35 = vld [vmem:[%s2155_s3 + $0x18] sm:$0xff] }
 0x652   :  { %897 = vrot.lane.b32.xlu0 %v1950_v55, %s1808_s26  ;;  %v1500_v55 = vld [vmem:[%s2157_s5 + $0x3] ss:$0 sm:$0xff] }
 0x6c1   :  { %v888_v42 = vpop.xlane.xlu0 %887 }
 0x6c2   :  { %1744 = vrcp.f32 %v888_v42  ;;  %v1135_v42 = vld [vmem:[%s2155_s3 + $0x10] sm:$0xff] }
 0x6c5   :  { %v885_v36 = vpop.xlane.xlu0 %884 }
 0x6c6   :  { %1746 = vrcp.f32 %v885_v36  ;;  %v1134_v36 = vld [vmem:[%s2155_s3 + $0x8] sm:$0xff] }
 0x6c9   :  { %v898_v37 = vpop.permute.xlu0 %897 }
 0x6ca   :  { %1629 = vmatprep.subr.mxu0 %v898_v37 }
 0x6cb   :  { %1630 = vmatpush3.msra.mxu0 %v898_v37  ;;  %v1133_v37 = vld [vmem:[%s2155_s3] sm:$0xff] }
 0x6cc   :  { %1631 = vmatprep.subr.mxu0 %v896_v38 }
 0x6cd   :  { %1632 = vmatpush3.msra.mxu0 %v896_v38 }
 0x6ce   :  { %1636 = vmatprep.subr.mxu0 %v1036_v3 }
 0x6cf   :  { %v1745_v39 = vpop.eup %1744 }
 0x6d0   :  { %v892_v47 = vmul.f32 %v1745_v39, %v1741_v61  ;;  %v1139_v61 = vld [vmem:[%s2155_s3 + $0x30] sm:$0xff] }
 0x6d1   :  { %1665 = vmatprep.subr.mxu1 %v1139_v61 }
 0x6d2   :  { %1666 = vmatpush3.msra.mxu1 %v1139_v61 }
 0x6d3   :  { %v1747_v45 = vpop.eup %1746  ;;  %1667 = vmatprep.subr.mxu1 %v1138_v57 }
 0x6d4   :  { %v891_v46 = vmul.f32 %v1747_v45, %v1743_v34  ;;  %1668 = vmatpush3.msra.mxu1 %v1138_v57  ;;  %v1137_v34 = vld [vmem:[%s2155_s3 + $0x20] sm:$0xff] }
 0x6d5   :  { %1669 = vmatprep.subr.mxu1 %v1137_v34 }
 0x6d6   :  { %1633 = vmatprep.mubr.msk.f32.mxu0 %vm272_vm2, %v891_v46  ;;  %1670 = vmatpush3.msra.mxu1 %v1137_v34  ;;  %v1512_v34 = vld [vmem:[%s2157_s5 + $0xb] ss:$0 sm:$0xff] }
 0x6d7   :  { %1634 = vmatmul.mubr.msk.f32.vlgmr.msra.gmra.mxu0 %vm272_vm2, %v892_v47  ;;  %1671 = vmatprep.subr.mxu1 %v1136_v35 }
 0x6d8   :  { %1637 = vmatpush3.msra.mxu0 %v1036_v3  ;;  %1672 = vmatpush3.msra.mxu1 %v1136_v35 }
 0x6d9   :  { %1638 = vmatprep.subr.mxu0 %v1035_v4  ;;  %1673 = vmatprep.subr.mxu1 %v1135_v42 }
 0x6da   :  { %1639 = vmatpush3.msra.mxu0 %v1035_v4  ;;  %1674 = vmatpush3.msra.mxu1 %v1135_v42 }
 0x6db   :  { %1640 = vmatprep.subr.mxu0 %v1034_v5  ;;  %1675 = vmatprep.subr.mxu1 %v1134_v36 }
 0x6dc   :  { %1641 = vmatpush3.msra.mxu0 %v1034_v5  ;;  %1676 = vmatpush3.msra.mxu1 %v1134_v36 }
 0x6dd   :  { %1642 = vmatprep.subr.mxu0 %v1033_v6  ;;  %1677 = vmatprep.subr.mxu1 %v1133_v37 }
 0x6de   :  { %1643 = vmatpush3.msra.mxu0 %v1033_v6  ;;  %1678 = vmatpush3.msra.mxu1 %v1133_v37 }
 0x797   :  { %v1635_v48 = vpop.f32.mrf.mxu0 }
 0x798   :  { %v983_v40 = vadd.f32 %v1635_v48, %v779_v19 }
 0x799   :  { %v973_v43 = vpop.f32.mrf.mxu0 }
 0x79a   :  { %v990_v49 = vadd.f32 %v1500_v55, %v983_v40  ;;  %v982_v50 = vadd.f32 %v973_v43, %v778_v21 }
 0x79c   :  { %v2020_v51 = vadd.f32 %v990_v49, %v1861_v1  ;;  %v989_v52 = vadd.f32 %v1500_v55, %v982_v50  ;;  %v1272_v50 = vld [vmem:[%s2156_s4 + $0x18] sm:$0xff] }
 0x79d   :  { %1682 = vmatprep.subr.mxu0 %v1272_v50 }
 0x79e   :  { %v2023_v53 = vadd.f32 %v989_v52, %v1859_v0  ;;  %v998_v54 = vsel %vm42_vm0, %v2020_v51, 0.0  ;;  %v1271_v52 = vld [vmem:[%s2156_s4 + $0x10] sm:$0xff] }
 0x79f   :  { %999 = vadd.xlane.f32.xlu0 %v998_v54  ;;  %v1270_v54 = vld [vmem:[%s2156_s4 + $0x8] sm:$0xff] }
 0x7a0   :  { %v995_v56 = vsel %vm42_vm0, %v2023_v53, 0.0 }
 0x7a1   :  { %996 = vadd.xlane.f32.xlu1 %v995_v56  ;;  %v1269_v56 = vld [vmem:[%s2156_s4] sm:$0xff] }
 0x828   :  { %v1000_v41 = vpop.xlane.xlu0 %999 }
 0x829   :  { %v1002_v44 = vmul.f32 0.03125, %v1000_v41  ;;  %v1503_v41 = vld [vmem:[%s2157_s5 + $0x6] ss:$0 sm:$0xff] }
 0x82a   :  { %v997_v58 = vpop.xlane.xlu1 %996 }
 0x82b   :  { %v1004_v59 = vsub.f32 %v2020_v51, %v1002_v44  ;;  %v1001_v60 = vmul.f32 0.03125, %v997_v58 }
 0x82d   :  { %v1003_v1 = vsub.f32 %v2023_v53, %v1001_v60  ;;  %v1006_v62 = vmul.f32 %v1004_v59, %v1004_v59 }
 0x82f   :  { %v1010_v0 = vsel %vm42_vm0, %v1006_v62, 0.0  ;;  %v1005_v63 = vmul.f32 %v1003_v1, %v1003_v1 }
 0x830   :  { %1011 = vadd.xlane.f32.xlu1 %v1010_v0 }
 0x831   :  { %v1007_v2 = vsel %vm42_vm0, %v1005_v63, 0.0 }
 0x832   :  { %1008 = vadd.xlane.f32.xlu0 %v1007_v2 }
 0x8b9   :  { %v1012_v7 = vpop.xlane.xlu1 %1011 }
 0x8ba   :  { %v1014_v8 = vmul.f32 0.03125, %v1012_v7 }
 0x8bb   :  { %v1009_v9 = vpop.xlane.xlu0 %1008 }
 0x8bc   :  { %v1016_v10 = vadd.f32 1e-05, %v1014_v8  ;;  %v1013_v11 = vmul.f32 0.03125, %v1009_v9 }
 0x8be   :  { %1748 = vrsqrt.f32 %v1016_v10  ;;  %v1015_v12 = vadd.f32 1e-05, %v1013_v11 }
 0x8c0   :  { %1750 = vrsqrt.f32 %v1015_v12 }
 0x8cb   :  { %v1749_v13 = vpop.eup %1748 }
 0x8cc   :  { %v1020_v15 = vmul.f32 %v1749_v13, %v1004_v59 }
 0x8cd   :  { %v1751_v16 = vpop.eup %1750 }
 0x8ce   :  { %v1019_v18 = vmul.f32 %v1751_v16, %v1003_v1  ;;  %v1026_v19 = vmul.f32 %v1501_v14, %v1020_v15  ;;  %v1507_v15 = vld [vmem:[%s2157_s5 + $0x8] ss:$0 sm:$0xff] }
 0x8d0   :  { %v1025_v20 = vmul.f32 %v1501_v14, %v1019_v18  ;;  %v1032_v21 = vadd.f32 %v1502_v17, %v1026_v19 }
 0x8d2   :  { %v1031_v22 = vadd.f32 %v1502_v17, %v1025_v20  ;;  %v1234_v23 = vsel %vm42_vm0, %v1032_v21, 0.0  ;;  %v1508_v20 = vld [vmem:[%s2157_s5 + $0x9] ss:$0 sm:$0xff] }
 0x8d3   :  { %1235 = vadd.xlane.f32.xlu1 %v1234_v23 }
 0x8d4   :  { %1644 = vmatprep.mubr.msk.f32.mxu0 %vm42_vm0, %v1031_v22  ;;  %v1231_v24 = vsel %vm42_vm0, %v1031_v22, 0.0 }
 0x8d5   :  { %1232 = vadd.xlane.f32.xlu0 %v1231_v24  ;;  %1645 = vmatmul.mubr.msk.f32.vlgmr.msra.gmra.mxu0 %vm42_vm0, %v1032_v21  ;;  %v1361_v24 = vld [vmem:[%s2156_s4 + $0x20] sm:$0xff] }
 0x8d6   :  { %1683 = vmatpush3.msra.mxu0 %v1272_v50 }
 0x8d7   :  { %1684 = vmatprep.subr.mxu0 %v1271_v52 }
 0x8d8   :  { %1685 = vmatpush3.msra.mxu0 %v1271_v52 }
 0x8d9   :  { %1686 = vmatprep.subr.mxu0 %v1270_v54 }
 0x8da   :  { %1687 = vmatpush3.msra.mxu0 %v1270_v54 }
 0x8db   :  { %1688 = vmatprep.subr.mxu0 %v1269_v56 }
 0x8dc   :  { %1689 = vmatpush3.msra.mxu0 %v1269_v56 }
 0x8dd   :  { %1693 = vmatprep.subr.mxu0 %v1361_v24 }
 0x95c   :  { %v1236_v38 = vpop.xlane.xlu1 %1235 }
 0x95d   :  { %v1238_v39 = vmul.f32 0.03125, %v1236_v38 }
 0x95e   :  { %v1233_v45 = vpop.xlane.xlu0 %1232 }
 0x95f   :  { %v1240_v46 = vsub.f32 %v1032_v21, %v1238_v39  ;;  %v1237_v47 = vmul.f32 0.03125, %v1233_v45 }
 0x961   :  { %v1239_v48 = vsub.f32 %v1031_v22, %v1237_v47  ;;  %v1242_v55 = vmul.f32 %v1240_v46, %v1240_v46 }
 0x963   :  { %v1246_v40 = vsel %vm42_vm0, %v1242_v55, 0.0  ;;  %v1241_v43 = vmul.f32 %v1239_v48, %v1239_v48 }
 0x964   :  { %1247 = vadd.xlane.f32.xlu1 %v1246_v40 }
 0x965   :  { %v1243_v49 = vsel %vm42_vm0, %v1241_v43, 0.0 }
 0x966   :  { %1244 = vadd.xlane.f32.xlu0 %v1243_v49 }
 0x995   :  { %v1646_v44 = vpop.f32.mrf.mxu0 }
 0x996   :  { %v1120_v58 = vadd.f32 %v1646_v44, %v1503_v41 }
 0x997   :  { %v1114_v59 = vpop.f32.mrf.mxu0 }
 0x998   :  { %v1126_v60 = vmul.f32 0.70710677, %v1120_v58  ;;  %v1115_v1 = vadd.f32 %v1503_v41, %v1114_v59  ;;  %v1124_v5 = vmul.f32 0.5, %v1120_v58 }
 0x99a   :  { %1752 = verf.f32 %v1126_v60  ;;  %v1125_v62 = vmul.f32 0.70710677, %v1115_v1  ;;  %v1123_v3 = vmul.f32 0.5, %v1115_v1 }
 0x99c   :  { %1754 = verf.f32 %v1125_v62 }
 0x9a7   :  { %v1753_v0 = vpop.eup %1752 }
 0x9a8   :  { %v1130_v2 = vadd.f32 1.0, %v1753_v0 }
 0x9a9   :  { %v1755_v63 = vpop.eup %1754 }
 0x9aa   :  { %v1129_v4 = vadd.f32 1.0, %v1755_v63  ;;  %v1132_v7 = vmul.f32 %v1130_v2, %v1124_v5 }
 0x9ac   :  { %v1131_v6 = vmul.f32 %v1129_v4, %v1123_v3 }
 0x9ae   :  { %1679 = vmatprep.mubr.f32.mxu1 %v1131_v6 }
 0x9af   :  { %1680 = vmatmul.mubr.f32.vlgmr.msra.gmra.mxu1 %v1132_v7 }
 0x9ed   :  { %v1248_v8 = vpop.xlane.xlu1 %1247 }
 0x9ee   :  { %v1250_v9 = vmul.f32 0.03125, %v1248_v8 }
 0x9ef   :  { %v1245_v10 = vpop.xlane.xlu0 %1244 }
 0x9f0   :  { %v1252_v11 = vadd.f32 1e-05, %v1250_v9  ;;  %v1249_v12 = vmul.f32 0.03125, %v1245_v10 }
 0x9f2   :  { %1756 = vrsqrt.f32 %v1252_v11  ;;  %v1251_v13 = vadd.f32 1e-05, %v1249_v12 }
 0x9f4   :  { %1758 = vrsqrt.f32 %v1251_v13 }
 0x9ff   :  { %v1757_v14 = vpop.eup %1756 }
 0xa00   :  { %v1256_v16 = vmul.f32 %v1757_v14, %v1240_v46 }
 0xa01   :  { %v1759_v17 = vpop.eup %1758 }
 0xa02   :  { %v1255_v18 = vmul.f32 %v1759_v17, %v1239_v48  ;;  %v1262_v19 = vmul.f32 %v1507_v15, %v1256_v16 }
 0xa04   :  { %v1261_v21 = vmul.f32 %v1507_v15, %v1255_v18  ;;  %v1268_v23 = vadd.f32 %v1508_v20, %v1262_v19 }
 0xa06   :  { %v1267_v22 = vadd.f32 %v1508_v20, %v1261_v21 }
 0xa08   :  { %1690 = vmatprep.mubr.msk.f32.mxu0 %vm42_vm0, %v1267_v22 }
 0xa09   :  { %1691 = vmatmul.mubr.msk.f32.vlgmr.msra.gmra.mxu0 %vm42_vm0, %v1268_v23 }
 0xa0a   :  { %1694 = vmatpush3.msra.mxu0 %v1361_v24 }
 0xa6f   :  { %v1681_v32 = vpop.f32.mrf.mxu1 }
 0xa70   :  { %v1226_v57 = vadd.f32 %v1681_v32, %v1506_v33 }
 0xa71   :  { %v1220_v61 = vpop.f32.mrf.mxu1 }
 0xa72   :  { %v1221_v35 = vadd.f32 %v1506_v33, %v1220_v61  ;;  %v1449_v36 = vadd.f32 %v1226_v57, %v2020_v51 }
 0xa74   :  { %v1448_v39 = vadd.f32 %v1221_v35, %v2023_v53 }
 0xac9   :  { %v1692_v26 = vpop.f32.mrf.mxu0 }
 0xaca   :  { %v1356_v27 = vadd.f32 %v1692_v26, %v1509_v25 }
 0xacb   :  { %v1350_v28 = vpop.f32.mrf.mxu0 }
 0xacc   :  { %v1351_v29 = vadd.f32 %v1509_v25, %v1350_v28  ;;  %v1360_v31 = vmax.f32 %v1356_v27, 0.0 }
 0xace   :  { %v1359_v30 = vmax.f32 %v1351_v29, 0.0 }
 0xad0   :  { %1695 = vmatprep.mubr.msk.f32.mxu0 %vm188_vm1, %v1359_v30 }
 0xad1   :  { %1696 = vmatmul.mubr.msk.f32.vlgmr.msra.gmra.mxu0 %vm188_vm1, %v1360_v31 }
 0xb91   :  { %v1697_v42 = vpop.f32.mrf.mxu0 }
 0xb92   :  { %v1445_v37 = vadd.f32 %v1697_v42, %v1512_v34 }
 0xb93   :  { %v1439_v38 = vpop.f32.mrf.mxu0 }
 0xb94   :  { %v1451_v45 = vadd.f32 %v1449_v36, %v1445_v37  ;;  %v1440_v46 = vadd.f32 %v1512_v34, %v1439_v38 }
 0xb96   :  { %1453 = vst.msk [vmem:[#allocation5 + $0x8] sm:$0xff] %vm42_vm0, %v1451_v45  ;;  %v1450_v47 = vadd.f32 %v1448_v39, %v1440_v46 }
 0xb98   :  { %1452 = vst.msk [vmem:[#allocation5] sm:$0xff] %vm42_vm0, %v1450_v47 }
 0xb99   :  { %1791 = shalt.err (!%p1788_p9)
}
 0xb9a   :  { %1465 = dma.vmem_to_hbm [thread:$0]  %s1460_s30, 256, %s2158_s6, [#allocation4], %s1805_s24, %s1805_s24, %s1806_s25  }
 0xb9b   :  { %1802 = dma.done.wait [#allocation4], 256  }
 0xb9c   :  { %1803 = vsyncadd [#allocation4], 4294967040 }
 0xb9d   :  { %1469 = vsyncpa [#allocation3], 1 }
 0xb9e   :  { %1470 = vsyncpa [#allocation4], 1 }

</bundles_post_ra>
